<compile_context>
chip_gen: v7x
topology: tpu7x:2x2x1
jax: 0.10.0
libtpu: 0.0.40
codegen_flags: <defaults>
</compile_context>

<pallas_src>
import functools

import numpy as np
import jax
import jax.numpy as jnp
from jax.experimental import pallas as pl
from jax.experimental.pallas import tpu as pltpu


def _hand_rgb_reg_kernel(x_ref, o_ref, *, inv_k):
    # x_ref: (2, R, Kp) -- [rhand; lhand] stacked, R = B*C rows, Kp = padded K on lanes.
    # o_ref: (R, Kp)
    x = x_ref[...].astype(jnp.float32)
    # Zero padding along the lane axis contributes 0 to the sum; multiply by the
    # true 1/K so the mean matches the unpadded reduction.
    mean = jnp.sum(x, axis=-1, keepdims=True) * inv_k        # (2, R, 1)  XLU reduce
    sq = (x - mean) ** 2                                     # (2, R, Kp) VPU
    o_ref[...] = (sq[0] + sq[1]).astype(o_ref.dtype)
    # TODO(synk): training use would need a custom_vjp reproducing the
    # detached-mean gradient of the PyTorch module (mean treated as a constant).


def hand_rgb_reg(rgb, rhand_idx, lhand_idx):
    """rgb: (B, N, C); rhand_idx / lhand_idx: static int index arrays, equal length K."""
    B, N, C = rgb.shape
    K = int(rhand_idx.shape[0])
    assert int(lhand_idx.shape[0]) == K, "hands must select the same number of vertices"

    # --- JAX glue: gather + layout plumbing to a lane-dense slab -------------
    rgb_t = jnp.swapaxes(rgb, 1, 2)                 # (B, C, N)
    rhand = jnp.take(rgb_t, rhand_idx, axis=2)      # (B, C, K)
    lhand = jnp.take(rgb_t, lhand_idx, axis=2)      # (B, C, K)
    x = jnp.stack([rhand, lhand], axis=0).reshape(2, B * C, K)

    kp = max(128, ((K + 127) // 128) * 128)         # lane-dense: multiple of 128
    if kp != K:
        x = jnp.pad(x, ((0, 0), (0, 0), (0, kp - K)))
    R = B * C

    out = pl.pallas_call(
        functools.partial(_hand_rgb_reg_kernel, inv_k=1.0 / K),
        out_shape=jax.ShapeDtypeStruct((R, kp), rgb.dtype),
        grid=(1,),
        in_specs=[pl.BlockSpec((2, R, kp), lambda i: (0, 0, 0))],
        out_specs=pl.BlockSpec((R, kp), lambda i: (0, 0)),
        compiler_params=pltpu.CompilerParams(
            dimension_semantics=("arbitrary",)),
    )(x)

    # Un-plumb the layout: (B*C, Kp) -> (B, K, C), dropping the lane padding.
    return jnp.swapaxes(out.reshape(B, C, kp)[:, :, :K], 1, 2)


def hand_rgb_reg_ref(rgb, rhand_idx, lhand_idx):
    r = rgb[:, rhand_idx, :]
    l = rgb[:, lhand_idx, :]
    rt = r.mean(axis=1, keepdims=True)
    lt = l.mean(axis=1, keepdims=True)
    return (r - rt) ** 2 + (l - lt) ** 2


if __name__ == "__main__":
    # Small synthetic shapes: B=2 batch, N=16 vertices, C=3 rgb channels.
    B, N, C = 2, 16, 3
    key = jax.random.PRNGKey(0)
    rgb = jax.random.uniform(key, (B, N, C), dtype=jnp.float32)

    # Boolean hand masks (as in PyTorch), equal-sized so the loss sum broadcasts.
    is_rhand = np.zeros((N,), dtype=bool)
    is_lhand = np.zeros((N,), dtype=bool)
    is_rhand[: N // 2] = True
    is_lhand[N // 2:] = True

    # Static mask -> index conversion (HandRGBReg has no parameters to init).
    rhand_idx = jnp.asarray(np.nonzero(is_rhand)[0], dtype=jnp.int32)
    lhand_idx = jnp.asarray(np.nonzero(is_lhand)[0], dtype=jnp.int32)

    loss = hand_rgb_reg(rgb, rhand_idx, lhand_idx)
    loss = jax.block_until_ready(loss)

    ref = hand_rgb_reg_ref(rgb, rhand_idx, lhand_idx)
    np.testing.assert_allclose(np.asarray(loss), np.asarray(ref), rtol=1e-6, atol=1e-6)

    print("KERNEL_OK")
</pallas_src>

<mosaic_0001>
module attributes {stable_mosaic.version = 11 : i64} {
  func.func @_hand_rgb_reg_kernel(%arg0: i32, %arg1: memref<2x6x128xf32, #tpu.memory_space<vmem>>, %arg2: memref<6x128xf32, #tpu.memory_space<vmem>>) attributes {dimension_semantics = [#tpu.dimension_semantics<arbitrary>], iteration_bounds = array<i64: 1>, scalar_prefetch = 0 : i64, scratch_operands = 0 : i64, tpu.core_type = #tpu.core_type<tc>, window_params = [{pipeline_mode = #tpu.pipeline_mode<synchronous>, transform_indices = @transform_0, window_bounds = array<i64: 2, 6, 128>}, {pipeline_mode = #tpu.pipeline_mode<synchronous>, transform_indices = @transform_1, window_bounds = array<i64: 6, 128>}]} {
    %c0 = arith.constant 0 : index
    %c0_0 = arith.constant 0 : index
    %c0_1 = arith.constant 0 : index
    %0 = vector.load %arg1[%c0, %c0_0, %c0_1] : memref<2x6x128xf32, #tpu.memory_space<vmem>>, vector<2x6x128xf32>
    %cst = arith.constant dense<0.000000e+00> : vector<2x6xf32>
    %1 = vector.multi_reduction <add>, %0, %cst [2] : vector<2x6x128xf32> to vector<2x6xf32>
    %2 = vector.shape_cast %1 : vector<2x6xf32> to vector<2x6x1xf32>
    %cst_2 = arith.constant 1.250000e-01 : f32
    %3 = vector.broadcast %cst_2 : f32 to vector<2x6x1xf32>
    %4 = arith.mulf %2, %3 : vector<2x6x1xf32>
    %5 = vector.broadcast %4 : vector<2x6x1xf32> to vector<2x6x128xf32>
    %6 = arith.subf %0, %5 : vector<2x6x128xf32>
    %7 = arith.mulf %6, %6 : vector<2x6x128xf32>
    %8 = vector.extract_strided_slice %7 {offsets = [0, 0, 0], sizes = [1, 6, 128], strides = [1, 1, 1]} : vector<2x6x128xf32> to vector<1x6x128xf32>
    %9 = vector.shape_cast %8 : vector<1x6x128xf32> to vector<6x128xf32>
    %10 = vector.extract_strided_slice %7 {offsets = [1, 0, 0], sizes = [1, 6, 128], strides = [1, 1, 1]} : vector<2x6x128xf32> to vector<1x6x128xf32>
    %11 = vector.shape_cast %10 : vector<1x6x128xf32> to vector<6x128xf32>
    %12 = arith.addf %9, %11 : vector<6x128xf32>
    %c0_3 = arith.constant 0 : index
    %c0_4 = arith.constant 0 : index
    %13 = vector.load %arg2[%c0_3, %c0_4] : memref<6x128xf32, #tpu.memory_space<vmem>>, vector<6x128xf32>
    tpu.vector_store %arg2[%c0_3, %c0_4], %12 {strides = array<i32>} : memref<6x128xf32, #tpu.memory_space<vmem>>, vector<6x128xf32>,
    return
  }
  func.func @transform_0(%arg0: i32) -> (i32, i32, i32) {
    %c0_i32 = arith.constant 0 : i32
    %c0_i32_0 = arith.constant 0 : i32
    %c0_i32_1 = arith.constant 0 : i32
    %c0_i32_2 = arith.constant 0 : i32
    return %c0_i32, %c0_i32_0, %c0_i32_1 : i32, i32, i32
  }
  func.func @transform_1(%arg0: i32) -> (i32, i32) {
    %c0_i32 = arith.constant 0 : i32
    %c0_i32_0 = arith.constant 0 : i32
    %c0_i32_1 = arith.constant 0 : i32
    return %c0_i32, %c0_i32_0 : i32, i32
  }
}

</mosaic_0001>

<bundles_post_ra>
// kernel: tpu_custom_call.1
= control target key start
LH: loop header
LB: loop body
LE: loop exit
PB: predicated region body
PF: predicated region fallthrough
CT: control target
= control target key end

     0   :  { %vm11_vm0 = vcmask 1045504   ;;  %s94_s0 = inlined_call_operand.vmem [shape: f32[2,6,128], index: 0, kind: input, shape index: {}]   ;;  %s95_s1 = inlined_call_operand.hbm [shape: f32[6,128], index: 1, kind: output, shape index: {}]  }
   0x1   :  { %v9_v0 = vld [vmem:[%s94_s0] sm:$0x3f]  ;;  %v10_v1 = vld [vmem:[%s94_s0 + $0x8] sm:$0x3f] }
   0x2   :  { %v12_v2 = vsel %vm11_vm0, %v9_v0, 0.0 }
   0x3   :  { %6 = vsyncpa [#allocation3], 0  ;;  %13 = vadd.xlane.f32.xlu0 %v12_v2  ;;  %v15_v3 = vsel %vm11_vm0, %v10_v1, 0.0  ;;  %s65_s10 = smov [#allocation2]  }
   0x4   :  { %s32_s11 = sshll.u32 %s65_s10, 4  ;;  %s33_s11 = int_to_ptr.vmem [resolvable:$true] %s32_s11 }
   0x5   :  { %s41_s12 = scalar_lea.vmem %s33_s11, 128  ;;  %p46_p1 = scmp.lt.s32.totalorder %s33_s11, %s33_s11 }
   0x6   :  { %p42_p0 = scmp.ne.s32.totalorder %s33_s11, %s41_s12  ;;  %p47_p2 = scmp.lt.s32.totalorder %s41_s12, %s41_s12 }
   0x7   :  { %16 = vadd.xlane.f32.xlu0 %v15_v3 }
   0x8   :  { %p48_p3 = por %p47_p2, %p46_p1 }
   0xa   :  { %p49_p4 = pnand %p48_p3, %p42_p0 }
  0x90   :  { %v14_v4 = vpop.xlane.xlu0 %13 }
  0x91   :  { %v18_v5 = vmul.f32 0.125, %v14_v4 }
  0x93   :  { %v20_v7 = vsub.f32 %v9_v0, %v18_v5 }
  0x94   :  { %v17_v6 = vpop.xlane.xlu0 %16 }
  0x95   :  { %v19_v8 = vmul.f32 0.125, %v17_v6  ;;  %v22_v10 = vmul.f32 %v20_v7, %v20_v7 }
  0x97   :  { %v21_v9 = vsub.f32 %v10_v1, %v19_v8 }
  0x99   :  { %v23_v11 = vmul.f32 %v21_v9, %v21_v9 }
  0x9b   :  { %v24_v12 = vadd.f32 %v23_v11, %v22_v10 }
  0x9d   :  { %25 = vst [vmem:[#allocation2] sm:$0x3f] %v24_v12 }
  0x9e   :  { %52 = shalt.err (!%p49_p4)
}
  0x9f   :  { %s53_s14 = scalar_lea.hbm %s95_s1, 128 }
  0xa0   :  { %p54_p5 = scmp.ne.s32.totalorder %s95_s1, %s53_s14  ;;  %p57_p6 = scmp.lt.u32.totalorder %s53_s14, %s95_s1 }
  0xa2   :  { %p59_p7 = pnand %p57_p6, %p54_p5 }
  0xa4   :  { %62 = shalt.err (!%p59_p7)
}
  0xa5   :  { %35 = dma.vmem_to_hbm [thread:$0]  %s33_s11, 128, %s95_s1, [#allocation3]  }
  0xa6   :  { %63 = dma.done.wait [#allocation3], 128  }
  0xa7   :  { %64 = vsyncadd [#allocation3], 4294967168 }
  0xa8   :  { %39 = vsyncpa [#allocation3], 1 }

</bundles_post_ra>
